<compile_context>
chip_gen: v7x
topology: tpu7x:2x2x1
jax: 0.10.0
libtpu: 0.0.40
codegen_flags: <defaults>
</compile_context>

<pallas_src>
import jax
import jax.numpy as jnp
from jax import lax
from jax.experimental import pallas as pl
from jax.experimental.pallas import tpu as pltpu


# ----------------------------------------------------------------------------
# Kernels
# ----------------------------------------------------------------------------
def _make_train_kernel(use_scratch):
    """Training path: w = mu + sigma * (eps_out ⊗ eps_in), y = x @ w.T + b."""

    def kernel(x_ref, wmu_ref, wsig_ref, eps_out_ref, eps_in_ref, b_ref,
               o_ref, *scratch):
        acc_ref = scratch[0] if use_scratch else o_ref  # f32 out: acc in-place
        k = pl.program_id(2)

        @pl.when(k == 0)
        def _():
            acc_ref[...] = jnp.zeros_like(acc_ref)

        # Noisy weight composed on-chip in the weight's NATIVE [out, in] layout.
        # Single fused elementwise expression (no separately materialized eps
        # tile → no extra vst pass per K step).  eps refs are already f32.
        w = (wmu_ref[...].astype(jnp.float32)
             + wsig_ref[...].astype(jnp.float32)
             * (eps_out_ref[...] * eps_in_ref[...])).astype(wmu_ref.dtype)

        # x [TM, TK] contracted with w [TN, TK] on dim 1 (== x @ w.T): the MXU
        # consumes the native weight layout; no wrapper / in-kernel transpose.
        acc_ref[...] += lax.dot_general(
            x_ref[...], w,
            dimension_numbers=(((1,), (1,)), ((), ())),
            preferred_element_type=jnp.float32)

        @pl.when(k == pl.num_programs(2) - 1)
        def _():
            o_ref[...] = (acc_ref[...]
                          + b_ref[...].astype(jnp.float32)).astype(o_ref.dtype)

    return kernel


def _make_eval_kernel(use_scratch):
    """Eval path: y = x @ weight_mu.T + bias_mu (no sigma/epsilon reads)."""

    def kernel(x_ref, wmu_ref, b_ref, o_ref, *scratch):
        acc_ref = scratch[0] if use_scratch else o_ref
        k = pl.program_id(2)

        @pl.when(k == 0)
        def _():
            acc_ref[...] = jnp.zeros_like(acc_ref)

        acc_ref[...] += lax.dot_general(
            x_ref[...], wmu_ref[...],
            dimension_numbers=(((1,), (1,)), ((), ())),
            preferred_element_type=jnp.float32)

        @pl.when(k == pl.num_programs(2) - 1)
        def _():
            o_ref[...] = (acc_ref[...]
                          + b_ref[...].astype(jnp.float32)).astype(o_ref.dtype)

    return kernel


# ----------------------------------------------------------------------------
# Wrapper
# ----------------------------------------------------------------------------
def _pick_tile(dim, target, align=128):
    """Largest multiple-of-`align` tile <= target that evenly divides `dim`;
    falls back to the full extent (always a legal block dim)."""
    if dim <= target:
        return dim
    t = (min(target, dim) // align) * align
    while t >= align:
        if dim % t == 0:
            return t
        t -= align
    return dim  # fallback: single block along this axis


def noisy_linear(x, weight_mu, weight_sigma, bias_mu, bias_sigma,
                 eps_in, eps_out, *, training=True,
                 tile_m=256, tile_n=512, tile_k=1024):
    """NoisyLinear forward.

    training=True : weight = mu + sigma * outer(eps_out, eps_in),
                    bias   = mu + sigma * eps_out
    training=False: weight = mu, bias = mu  (mu-only kernel)

    Matches the PyTorch module: weight_epsilon = eps_out.ger(eps_in),
    bias_epsilon = eps_out, output = F.linear(x, weight, bias) = x @ w.T + b.
    Weights are consumed in their native [out_features, in_features] layout.
    """
    B, in_f = x.shape
    out_f, in_f2 = weight_mu.shape
    assert in_f2 == in_f, "weight_mu must be [out_features, in_features]"

    tm = _pick_tile(B, tile_m, 8)          # sublane-aligned batch tiles
    tn = _pick_tile(out_f, tile_n, 128)    # lane-dense output tiles
    tk = _pick_tile(in_f, tile_k, 128)
    # v7x: ensure the combined parallel extent has >= 2 blocks so both
    # TensorCores get work (no-op on v5e/v6e, which have a single TC).
    if (B // tm) * (out_f // tn) < 2 and out_f >= 256:
        tn = _pick_tile(out_f, max(128, (out_f // 2) // 128 * 128), 128)

    grid = (B // tm, out_f // tn, in_f // tk)       # reduction axis (K) last

    x_spec = pl.BlockSpec((tm, tk), lambda m, n, k: (m, k))
    w_spec = pl.BlockSpec((tn, tk), lambda m, n, k: (n, k))     # native layout
    ecol_spec = pl.BlockSpec((tn, 1), lambda m, n, k: (n, 0))   # eps_out column
    erow_spec = pl.BlockSpec((1, tk), lambda m, n, k: (0, k))   # eps_in row
    b_spec = pl.BlockSpec((1, tn), lambda m, n, k: (0, n))      # composed bias
    o_spec = pl.BlockSpec((tm, tn), lambda m, n, k: (m, n))     # resident over k

    out_dtype = x.dtype
    # f32 output: accumulate directly into the resident output block (saves a
    # (tm, tn) VMEM buffer + a copy per (m, n) block); scratch only otherwise.
    use_scratch = out_dtype != jnp.float32
    scratch = [pltpu.VMEM((tm, tn), jnp.float32)] if use_scratch else []

    out_shape = jax.ShapeDtypeStruct((B, out_f), out_dtype)
    compiler_params = pltpu.CompilerParams(
        dimension_semantics=("parallel", "parallel", "arbitrary"))

    if training:
        # Bias composition is O(out_f) -> wrapper; the [out_f, in_f] weight
        # epsilon is composed on-chip and never hits HBM.
        bias = (bias_mu.astype(jnp.float32)
                + bias_sigma.astype(jnp.float32)
                * eps_out.astype(jnp.float32)).reshape(1, out_f)
        eps_out_c = eps_out.astype(jnp.float32).reshape(out_f, 1)
        eps_in_r = eps_in.astype(jnp.float32).reshape(1, in_f)
        return pl.pallas_call(
            _make_train_kernel(use_scratch),
            out_shape=out_shape,
            grid_spec=pltpu.PrefetchScalarGridSpec(
                num_scalar_prefetch=0,
                grid=grid,
                in_specs=[x_spec, w_spec, w_spec, ecol_spec, erow_spec, b_spec],
                out_specs=o_spec,
                scratch_shapes=scratch),
            compiler_params=compiler_params,
        )(x, weight_mu, weight_sigma, eps_out_c, eps_in_r, bias)

    # Eval: mu-only kernel — no sigma / epsilon HBM traffic.
    bias = bias_mu.astype(jnp.float32).reshape(1, out_f)
    return pl.pallas_call(
        _make_eval_kernel(use_scratch),
        out_shape=out_shape,
        grid_spec=pltpu.PrefetchScalarGridSpec(
            num_scalar_prefetch=0,
            grid=grid,
            in_specs=[x_spec, w_spec, b_spec],
            out_specs=o_spec,
            scratch_shapes=scratch),
        compiler_params=compiler_params,
    )(x, weight_mu, bias)


# ----------------------------------------------------------------------------
# Init / reference (plain JAX glue, mirrors reset_parameters / reset_noise)
# ----------------------------------------------------------------------------
def _scale_noise(key, size):
    x = jax.random.normal(key, (size,), dtype=jnp.float32)
    return jnp.sign(x) * jnp.sqrt(jnp.abs(x))


def init_noisy_linear_params(key, in_features, out_features, std_init=0.5):
    k_wmu, k_bmu, k_ein, k_eout = jax.random.split(key, 4)
    mu_range = 1.0 / (in_features ** 0.5)

    weight_mu = jax.random.uniform(
        k_wmu, (out_features, in_features), jnp.float32, -mu_range, mu_range)
    weight_sigma = jnp.full((out_features, in_features),
                            std_init / (in_features ** 0.5), jnp.float32)
    bias_mu = jax.random.uniform(
        k_bmu, (out_features,), jnp.float32, -mu_range, mu_range)
    bias_sigma = jnp.full((out_features,),
                          std_init / (out_features ** 0.5), jnp.float32)

    eps_in = _scale_noise(k_ein, in_features)     # epsilon_in
    eps_out = _scale_noise(k_eout, out_features)  # epsilon_out (= bias_epsilon)

    return dict(weight_mu=weight_mu, weight_sigma=weight_sigma,
                bias_mu=bias_mu, bias_sigma=bias_sigma,
                eps_in=eps_in, eps_out=eps_out)


def noisy_linear_ref(x, p, training=True):
    weight_epsilon = jnp.outer(p["eps_out"], p["eps_in"])  # eps_out.ger(eps_in)
    bias_epsilon = p["eps_out"]
    if training:
        w = p["weight_mu"] + p["weight_sigma"] * weight_epsilon
        b = p["bias_mu"] + p["bias_sigma"] * bias_epsilon
    else:
        w = p["weight_mu"]
        b = p["bias_mu"]
    return x @ w.T + b


def _run_case(key, batch, in_f, out_f, **tile_kw):
    k_param, k_x = jax.random.split(key)
    params = init_noisy_linear_params(k_param, in_f, out_f)
    x = jax.random.normal(k_x, (batch, in_f), dtype=jnp.float32)

    for training in (True, False):
        out = jax.block_until_ready(
            noisy_linear(x, params["weight_mu"], params["weight_sigma"],
                         params["bias_mu"], params["bias_sigma"],
                         params["eps_in"], params["eps_out"],
                         training=training, **tile_kw))
        ref = noisy_linear_ref(x, params, training=training)
        assert out.shape == (batch, out_f)
        assert jnp.allclose(out, ref, atol=1e-4, rtol=1e-5), (
            f"mismatch vs reference (training={training}, "
            f"shape=({batch},{in_f},{out_f}))")


if __name__ == "__main__":
    key = jax.random.PRNGKey(0)
    k1, k2, k3 = jax.random.split(key, 3)

    # Case 1: small single-tile layer (B=8, in=64, out=128) — full-extent blocks.
    _run_case(k1, batch=8, in_f=64, out_f=128)

    # Case 2: multi-tile (N, K) grid with resident accumulation into o_ref
    # (B=8, in=256, out=256, 128x128 tiles -> grid (1, 2, 2)).
    _run_case(k2, batch=8, in_f=256, out_f=256, tile_n=128, tile_k=128)

    # Case 3: exercises batch (M) tiling and the v7x >=2-parallel-block N split
    # (B=16, in=256, out=512, tile_m=8 -> grid (2, 2, 1)).
    _run_case(k3, batch=16, in_f=256, out_f=512, tile_m=8)

    print("KERNEL_OK")
</pallas_src>

<mosaic_0001>
module attributes {stable_mosaic.version = 11 : i64} {
  func.func @kernel(%arg0: i32, %arg1: i32, %arg2: i32, %arg3: memref<8x64xf32, #tpu.memory_space<vmem>>, %arg4: memref<128x64xf32, #tpu.memory_space<vmem>>, %arg5: memref<128x64xf32, #tpu.memory_space<vmem>>, %arg6: memref<128x1xf32, #tpu.memory_space<vmem>>, %arg7: memref<1x64xf32, #tpu.memory_space<vmem>>, %arg8: memref<1x128xf32, #tpu.memory_space<vmem>>, %arg9: memref<8x128xf32, #tpu.memory_space<vmem>>) attributes {dimension_semantics = [#tpu.dimension_semantics<parallel>, #tpu.dimension_semantics<parallel>, #tpu.dimension_semantics<arbitrary>], iteration_bounds = array<i64: 1, 1, 1>, scalar_prefetch = 0 : i64, scratch_operands = 0 : i64, tpu.core_type = #tpu.core_type<tc>, window_params = [{transform_indices = @transform_0, window_bounds = array<i64: 8, 64>}, {transform_indices = @transform_1, window_bounds = array<i64: 128, 64>}, {transform_indices = @transform_2, window_bounds = array<i64: 128, 64>}, {transform_indices = @transform_3, window_bounds = array<i64: 128, 1>}, {transform_indices = @transform_4, window_bounds = array<i64: 1, 64>}, {transform_indices = @transform_5, window_bounds = array<i64: 1, 128>}, {transform_indices = @transform_6, window_bounds = array<i64: 8, 128>}]} {
    %c0_i32 = arith.constant 0 : i32
    %0 = arith.cmpi eq, %arg2, %c0_i32 : i32
    %1 = arith.extui %0 : i1 to i32
    %c0_i32_0 = arith.constant 0 : i32
    %2 = arith.cmpi ne, %1, %c0_i32_0 : i32
    scf.if %2 {
      %cst_16 = arith.constant 0.000000e+00 : f32
      %20 = vector.broadcast %cst_16 : f32 to vector<8x128xf32>
      %c0_17 = arith.constant 0 : index
      %c0_18 = arith.constant 0 : index
      %21 = vector.load %arg9[%c0_17, %c0_18] : memref<8x128xf32, #tpu.memory_space<vmem>>, vector<8x128xf32>
      tpu.vector_store %arg9[%c0_17, %c0_18], %20 {strides = array<i32>} : memref<8x128xf32, #tpu.memory_space<vmem>>, vector<8x128xf32>,
    } else {
    }
    %c0 = arith.constant 0 : index
    %c0_1 = arith.constant 0 : index
    %3 = vector.load %arg4[%c0, %c0_1] : memref<128x64xf32, #tpu.memory_space<vmem>>, vector<128x64xf32>
    %c0_2 = arith.constant 0 : index
    %c0_3 = arith.constant 0 : index
    %4 = vector.load %arg5[%c0_2, %c0_3] : memref<128x64xf32, #tpu.memory_space<vmem>>, vector<128x64xf32>
    %c0_4 = arith.constant 0 : index
    %c0_5 = arith.constant 0 : index
    %5 = vector.load %arg6[%c0_4, %c0_5] : memref<128x1xf32, #tpu.memory_space<vmem>>, vector<128x1xf32>
    %c0_6 = arith.constant 0 : index
    %c0_7 = arith.constant 0 : index
    %6 = vector.load %arg7[%c0_6, %c0_7] : memref<1x64xf32, #tpu.memory_space<vmem>>, vector<1x64xf32>
    %7 = vector.broadcast %5 : vector<128x1xf32> to vector<128x64xf32>
    %8 = vector.broadcast %6 : vector<1x64xf32> to vector<128x64xf32>
    %9 = arith.mulf %7, %8 : vector<128x64xf32>
    %10 = arith.mulf %4, %9 : vector<128x64xf32>
    %11 = arith.addf %3, %10 : vector<128x64xf32>
    %c0_8 = arith.constant 0 : index
    %c0_9 = arith.constant 0 : index
    %12 = vector.load %arg9[%c0_8, %c0_9] : memref<8x128xf32, #tpu.memory_space<vmem>>, vector<8x128xf32>
    %c0_10 = arith.constant 0 : index
    %c0_11 = arith.constant 0 : index
    %13 = vector.load %arg3[%c0_10, %c0_11] : memref<8x64xf32, #tpu.memory_space<vmem>>, vector<8x64xf32>
    %cst = arith.constant dense<0.000000e+00> : vector<8x128xf32>
    %14 = tpu.matmul %13, %11, %cst {dimension_numbers = #tpu.dot_dimension_numbers<[1], [1], [0], [0], [0, 0, 1, 0], [], []>} : vector<8x64xf32>, vector<128x64xf32>, vector<8x128xf32> -> vector<8x128xf32>
    %15 = arith.addf %12, %14 : vector<8x128xf32>
    %c0_12 = arith.constant 0 : index
    %c0_13 = arith.constant 0 : index
    %16 = vector.load %arg9[%c0_12, %c0_13] : memref<8x128xf32, #tpu.memory_space<vmem>>, vector<8x128xf32>
    tpu.vector_store %arg9[%c0_12, %c0_13], %15 {strides = array<i32>} : memref<8x128xf32, #tpu.memory_space<vmem>>, vector<8x128xf32>,
    %c0_i32_14 = arith.constant 0 : i32
    %17 = arith.cmpi eq, %arg2, %c0_i32_14 : i32
    %18 = arith.extui %17 : i1 to i32
    %c0_i32_15 = arith.constant 0 : i32
    %19 = arith.cmpi ne, %18, %c0_i32_15 : i32
    scf.if %19 {
      %c0_16 = arith.constant 0 : index
      %c0_17 = arith.constant 0 : index
      %20 = vector.load %arg9[%c0_16, %c0_17] : memref<8x128xf32, #tpu.memory_space<vmem>>, vector<8x128xf32>
      %c0_18 = arith.constant 0 : index
      %c0_19 = arith.constant 0 : index
      %21 = vector.load %arg8[%c0_18, %c0_19] : memref<1x128xf32, #tpu.memory_space<vmem>>, vector<1x128xf32>
      %22 = vector.broadcast %21 : vector<1x128xf32> to vector<8x128xf32>
      %23 = arith.addf %20, %22 : vector<8x128xf32>
      %c0_20 = arith.constant 0 : index
      %c0_21 = arith.constant 0 : index
      %24 = vector.load %arg9[%c0_20, %c0_21] : memref<8x128xf32, #tpu.memory_space<vmem>>, vector<8x128xf32>
      tpu.vector_store %arg9[%c0_20, %c0_21], %23 {strides = array<i32>} : memref<8x128xf32, #tpu.memory_space<vmem>>, vector<8x128xf32>,
    } else {
    }
    return
  }
  func.func @transform_0(%arg0: i32, %arg1: i32, %arg2: i32) -> (i32, i32) {
    %c0_i32 = arith.constant 0 : i32
    return %arg0, %arg2 : i32, i32
  }
  func.func @transform_1(%arg0: i32, %arg1: i32, %arg2: i32) -> (i32, i32) {
    %c0_i32 = arith.constant 0 : i32
    return %arg1, %arg2 : i32, i32
  }
  func.func @transform_2(%arg0: i32, %arg1: i32, %arg2: i32) -> (i32, i32) {
    %c0_i32 = arith.constant 0 : i32
    return %arg1, %arg2 : i32, i32
  }
  func.func @transform_3(%arg0: i32, %arg1: i32, %arg2: i32) -> (i32, i32) {
    %c0_i32 = arith.constant 0 : i32
    %c0_i32_0 = arith.constant 0 : i32
    return %arg1, %c0_i32 : i32, i32
  }
  func.func @transform_4(%arg0: i32, %arg1: i32, %arg2: i32) -> (i32, i32) {
    %c0_i32 = arith.constant 0 : i32
    %c0_i32_0 = arith.constant 0 : i32
    return %c0_i32, %arg2 : i32, i32
  }
  func.func @transform_5(%arg0: i32, %arg1: i32, %arg2: i32) -> (i32, i32) {
    %c0_i32 = arith.constant 0 : i32
    %c0_i32_0 = arith.constant 0 : i32
    return %c0_i32, %arg1 : i32, i32
  }
  func.func @transform_6(%arg0: i32, %arg1: i32, %arg2: i32) -> (i32, i32) {
    %c0_i32 = arith.constant 0 : i32
    return %arg0, %arg1 : i32, i32
  }
}

</mosaic_0001>

<bundles_post_ra>
// kernel: tpu_custom_call.1
= control target key start
LH: loop header
LB: loop body
LE: loop exit
PB: predicated region body
PF: predicated region fallthrough
CT: control target
= control target key end

     0   :  { %v499_v2 = vmov 0   ;;  %s753_s0 = inlined_call_operand.vmem [shape: f32[8,64], index: 0, kind: input, shape index: {}]   ;;  %s754_s1 = inlined_call_operand.vmem [shape: f32[128,64], index: 1, kind: input, shape index: {}]   ;;  %s755_s2 = inlined_call_operand.vmem [shape: f32[128,64], index: 2, kind: input, shape index: {}]   ;;  %s756_s3 = inlined_call_operand.vmem [shape: f32[128,1], index: 3, kind: input, shape index: {}]   ;;  %s757_s4 = inlined_call_operand.vmem [shape: f32[1,64], index: 4, kind: input, shape index: {}]   ;;  %s758_s5 = inlined_call_operand.vmem [shape: f32[1,128], index: 5, kind: input, shape index: {}]   ;;  %s759_s6 = inlined_call_operand.hbm [shape: f32[8,128], index: 6, kind: output, shape index: {}]  }
   0x1   :  { %v63_v0 = vld [vmem:[%s756_s3 + $0x10] sm:$0xff]  ;;  %v61_v1 = vld [vmem:[%s756_s3] sm:$0xff]  ;;  %474 = vset.pattern.permute.xlu1 %v499_v2  ;;  %473 = vset.pattern.permute.xlu0 %v499_v2  ;;  %v64_v3 = vld [vmem:[%s756_s3 + $0x18] sm:$0xff] }
   0x2   :  { %90 = vperm.xlu1 %474, %v63_v0   ;;  %80 = vperm.xlu0 %473, %v61_v1   ;;  %v62_v4 = vld [vmem:[%s756_s3 + $0x8] sm:$0xff]  ;;  %v65_v6 = vld [vmem:[%s756_s3 + $0x20] sm:$0xff] }
   0x3   :  { %v66_v5 = vld [vmem:[%s756_s3 + $0x28] sm:$0xff] }
   0x6   :  { %95 = vperm.xlu1 %474, %v64_v3   ;;  %85 = vperm.xlu0 %473, %v62_v4  }
   0x7   :  { %11 = vsyncpa [#allocation3], 0  ;;  %v68_v7 = vld [vmem:[%s756_s3 + $0x38] sm:$0xff]  ;;  %v67_v8 = vld [vmem:[%s756_s3 + $0x30] sm:$0xff]  ;;  %v500_v9 = vmov 0.0|0.0   ;;  %vm501_vm0 = vmmov 0  }
   0x8   :  { %436 = vmatprep.subr.bf16.mxu0 %v500_v9  ;;  %v70_v10 = vld [vmem:[%s756_s3 + $0x48] sm:$0xff]  ;;  %v69_v11 = vld [vmem:[%s756_s3 + $0x40] sm:$0xff]  ;;  %v72_v12 = vld [vmem:[%s756_s3 + $0x58] sm:$0xff]  ;;  %v502_v18 = vmov 0.0   ;;  %vm214_vm1 = vcmask 523264   ;;  %s503_s19 = smov [#allocation2]  }
   0x9   :  { %v71_v13 = vld [vmem:[%s756_s3 + $0x50] sm:$0xff]  ;;  %v74_v14 = vld [vmem:[%s756_s3 + $0x68] sm:$0xff]  ;;  %v73_v15 = vld [vmem:[%s756_s3 + $0x60] sm:$0xff]  ;;  %433 = vmatprep.mubr.msk.f32.mxu0 %vm501_vm0, %v502_v18  ;;  %s357_s20 = sshll.u32 %s503_s19, 4  ;;  %s358_s20 = int_to_ptr.vmem [resolvable:$true] %s357_s20 }
   0xa   :  { %105 = vperm.xlu1 %474, %v66_v5   ;;  %100 = vperm.xlu0 %473, %v65_v6   ;;  %v76_v16 = vld [vmem:[%s756_s3 + $0x78] sm:$0xff]  ;;  %v75_v17 = vld [vmem:[%s756_s3 + $0x70] sm:$0xff]  ;;  %v591_v19 = vld [vmem:[%s757_s4] ss:$0 sm:$0xff]  ;;  %s475_s21 = scalar_lea.vmem %s358_s20, 128  ;;  %p480_p1 = scmp.lt.s32.totalorder %s358_s20, %s358_s20 }
   0xb   :  { %v45_v23 = vld [vmem:[%s755_s2] sm:$0xff]  ;;  %v46_v25 = vld [vmem:[%s755_s2 + $0x8] sm:$0xff]  ;;  %v47_v34 = vld [vmem:[%s755_s2 + $0x10] sm:$0xff]  ;;  %p476_p0 = scmp.ne.s32.totalorder %s358_s20, %s475_s21  ;;  %p481_p2 = scmp.lt.s32.totalorder %s475_s21, %s475_s21 }
   0xc   :  { %v29_v28 = vld [vmem:[%s754_s1] sm:$0xff]  ;;  %v30_v30 = vld [vmem:[%s754_s1 + $0x8] sm:$0xff]  ;;  %v48_v35 = vld [vmem:[%s755_s2 + $0x18] sm:$0xff] }
   0xd   :  { %vm617_vm2 = vmpackc.low %vm214_vm1, %vm214_vm1  ;;  %v31_v42 = vld [vmem:[%s754_s1 + $0x10] sm:$0xff]  ;;  %v32_v43 = vld [vmem:[%s754_s1 + $0x18] sm:$0xff]  ;;  %p482_p3 = por %p481_p2, %p480_p1 }
   0xe   :  { %115 = vperm.xlu1 %474, %v68_v7   ;;  %110 = vperm.xlu0 %473, %v67_v8   ;;  %v50_v50 = vld [vmem:[%s755_s2 + $0x28] sm:$0xff]  ;;  %v49_v51 = vld [vmem:[%s755_s2 + $0x20] sm:$0xff]  ;;  %v52_v63 = vld [vmem:[%s755_s2 + $0x38] sm:$0xff] }
   0xf   :  { %v34_v55 = vld [vmem:[%s754_s1 + $0x28] sm:$0xff]  ;;  %v33_v56 = vld [vmem:[%s754_s1 + $0x20] sm:$0xff]  ;;  %v51_v0 = vld [vmem:[%s755_s2 + $0x30] sm:$0xff]  ;;  %p483_p4 = pnand %p482_p3, %p476_p0 }
  0x10   :  { %v36_v4 = vld [vmem:[%s754_s1 + $0x38] sm:$0xff]  ;;  %v35_v5 = vld [vmem:[%s754_s1 + $0x30] sm:$0xff]  ;;  %v38_v18 = vld [vmem:[%s754_s1 + $0x48] sm:$0xff] }
  0x12   :  { %125 = vperm.xlu1 %474, %v70_v10   ;;  %120 = vperm.xlu0 %473, %v69_v11  }
  0x16   :  { %135 = vperm.xlu1 %474, %v72_v12   ;;  %130 = vperm.xlu0 %473, %v71_v13   ;;  %v54_v13 = vld [vmem:[%s755_s2 + $0x48] sm:$0xff] }
  0x1a   :  { %145 = vperm.xlu1 %474, %v74_v14   ;;  %140 = vperm.xlu0 %473, %v73_v15   ;;  %v53_v14 = vld [vmem:[%s755_s2 + $0x40] sm:$0xff] }
  0x1e   :  { %155 = vperm.xlu1 %474, %v76_v16   ;;  %150 = vperm.xlu0 %473, %v75_v17  }
  0x81   :  { %v91_v20 = vpop.permute.xlu1 %90  ;;  %v81_v21 = vpop.permute.xlu0 %80 }
  0x82   :  { %v164_v22 = vmul.f32 %v591_v19, %v81_v21  ;;  %v166_v31 = vmul.f32 %v591_v19, %v91_v20  ;;  %v37_v20 = vld [vmem:[%s754_s1 + $0x40] sm:$0xff] }
  0x84   :  { %v180_v26 = vmul.f32 %v164_v22, %v45_v23  ;;  %v182_v39 = vmul.f32 %v166_v31, %v47_v34 }
  0x85   :  { %v86_v24 = vpop.permute.xlu0 %85  ;;  %v96_v29 = vpop.permute.xlu1 %95 }
  0x86   :  { %v165_v27 = vmul.f32 %v591_v19, %v86_v24  ;;  %v167_v32 = vmul.f32 %v591_v19, %v96_v29  ;;  %v196_v36 = vadd.f32 %v180_v26, %v29_v28  ;;  %v198_v46 = vadd.f32 %v182_v39, %v31_v42  ;;  %v55_v28 = vld [vmem:[%s755_s2 + $0x50] sm:$0xff]  ;;  %v57_v42 = vld [vmem:[%s755_s2 + $0x60] sm:$0xff] }
  0x88   :  { %v181_v33 = vmul.f32 %v165_v27, %v46_v25  ;;  %v183_v40 = vmul.f32 %v167_v32, %v48_v35  ;;  %v56_v27 = vld [vmem:[%s755_s2 + $0x58] sm:$0xff] }
  0x89   :  { %v106_v44 = vpop.permute.xlu1 %105  ;;  %v101_v45 = vpop.permute.xlu0 %100  ;;  %v40_v32 = vld [vmem:[%s754_s1 + $0x58] sm:$0xff] }
  0x8a   :  { %v197_v37 = vadd.f32 %v181_v33, %v30_v30  ;;  %v199_v47 = vadd.f32 %v183_v40, %v32_v43  ;;  %v169_v48 = vmul.f32 %v591_v19, %v106_v44  ;;  %v168_v49 = vmul.f32 %v591_v19, %v101_v45  ;;  %v39_v33 = vld [vmem:[%s754_s1 + $0x50] sm:$0xff] }
  0x8c   :  { %v437_v41 = vpack.c.bf16 %v197_v37, %v196_v36  ;;  %v441_v52 = vpack.c.bf16 %v199_v47, %v198_v46  ;;  %v185_v53 = vmul.f32 %v169_v48, %v50_v50  ;;  %v184_v54 = vmul.f32 %v168_v49, %v49_v51  ;;  %v42_v46 = vld [vmem:[%s754_s1 + $0x68] sm:$0xff]  ;;  %v41_v47 = vld [vmem:[%s754_s1 + $0x60] sm:$0xff] }
  0x8d   :  { %v116_v57 = vpop.permute.xlu1 %115  ;;  %v111_v58 = vpop.permute.xlu0 %110 }
  0x8e   :  { %439 = vmatpush3.bf16.xpose.msk.msra.mxu0 %vm617_vm2, %v437_v41  ;;  %v201_v59 = vadd.f32 %v185_v53, %v34_v55  ;;  %v200_v60 = vadd.f32 %v184_v54, %v33_v56  ;;  %v171_v61 = vmul.f32 %v591_v19, %v116_v57  ;;  %v170_v62 = vmul.f32 %v591_v19, %v111_v58  ;;  %v58_v41 = vld [vmem:[%s755_s2 + $0x68] sm:$0xff]  ;;  %v60_v54 = vld [vmem:[%s755_s2 + $0x78] sm:$0xff]  ;;  %v59_v55 = vld [vmem:[%s755_s2 + $0x70] sm:$0xff] }
  0x8f   :  { %440 = vmatprep.subr.bf16.mxu0 %v500_v9 }
  0x90   :  { %v445_v1 = vpack.c.bf16 %v201_v59, %v200_v60  ;;  %v187_v2 = vmul.f32 %v171_v61, %v52_v63  ;;  %v186_v3 = vmul.f32 %v170_v62, %v51_v0  ;;  %v44_v59 = vld [vmem:[%s754_s1 + $0x78] sm:$0xff]  ;;  %v43_v60 = vld [vmem:[%s754_s1 + $0x70] sm:$0xff]  ;;  %v213_v63 = vld [vmem:[%s753_s0] sm:$0xff] }
  0x91   :  { %v126_v6 = vpop.permute.xlu1 %125  ;;  %v121_v7 = vpop.permute.xlu0 %120 }
  0x92   :  { %v203_v8 = vadd.f32 %v187_v2, %v36_v4  ;;  %v202_v10 = vadd.f32 %v186_v3, %v35_v5  ;;  %v173_v11 = vmul.f32 %v591_v19, %v126_v6  ;;  %v172_v12 = vmul.f32 %v591_v19, %v121_v7 }
  0x94   :  { %v449_v15 = vpack.c.bf16 %v203_v8, %v202_v10  ;;  %v189_v16 = vmul.f32 %v173_v11, %v54_v13  ;;  %v188_v17 = vmul.f32 %v172_v12, %v53_v14 }
  0x95   :  { %v136_v21 = vpop.permute.xlu1 %135  ;;  %v131_v22 = vpop.permute.xlu0 %130 }
  0x96   :  { %443 = vmatpush3.bf16.xpose.msk.msra.mxu0 %vm617_vm2, %v441_v52  ;;  %v205_v23 = vadd.f32 %v189_v16, %v38_v18  ;;  %v204_v24 = vadd.f32 %v188_v17, %v37_v20  ;;  %v175_v25 = vmul.f32 %v591_v19, %v136_v21  ;;  %v174_v26 = vmul.f32 %v591_v19, %v131_v22 }
  0x97   :  { %444 = vmatprep.subr.bf16.mxu0 %v500_v9 }
  0x98   :  { %v453_v29 = vpack.c.bf16 %v205_v23, %v204_v24  ;;  %v191_v30 = vmul.f32 %v175_v25, %v56_v27  ;;  %v190_v31 = vmul.f32 %v174_v26, %v55_v28 }
  0x99   :  { %v146_v34 = vpop.permute.xlu1 %145  ;;  %v141_v35 = vpop.permute.xlu0 %140 }
  0x9a   :  { %v207_v36 = vadd.f32 %v191_v30, %v40_v32  ;;  %v206_v37 = vadd.f32 %v190_v31, %v39_v33  ;;  %v177_v39 = vmul.f32 %v591_v19, %v146_v34  ;;  %v176_v40 = vmul.f32 %v591_v19, %v141_v35 }
  0x9c   :  { %v457_v43 = vpack.c.bf16 %v207_v36, %v206_v37  ;;  %v193_v44 = vmul.f32 %v177_v39, %v58_v41  ;;  %v192_v45 = vmul.f32 %v176_v40, %v57_v42 }
  0x9d   :  { %v156_v48 = vpop.permute.xlu1 %155  ;;  %v151_v49 = vpop.permute.xlu0 %150 }
  0x9e   :  { %447 = vmatpush3.bf16.xpose.msk.msra.mxu0 %vm617_vm2, %v445_v1  ;;  %v209_v50 = vadd.f32 %v193_v44, %v42_v46  ;;  %v208_v51 = vadd.f32 %v192_v45, %v41_v47  ;;  %v179_v52 = vmul.f32 %v591_v19, %v156_v48  ;;  %v178_v53 = vmul.f32 %v591_v19, %v151_v49  ;;  %v383_v1 = vld [vmem:[%s758_s5] ss:$0 sm:$0xff] }
  0x9f   :  { %448 = vmatprep.subr.bf16.mxu0 %v500_v9 }
  0xa0   :  { %v461_v56 = vpack.c.bf16 %v209_v50, %v208_v51  ;;  %v195_v57 = vmul.f32 %v179_v52, %v60_v54  ;;  %v194_v58 = vmul.f32 %v178_v53, %v59_v55 }
  0xa2   :  { %v211_v19 = vadd.f32 %v195_v57, %v44_v59  ;;  %v210_v61 = vadd.f32 %v194_v58, %v43_v60 }
  0xa4   :  { %v465_v62 = vpack.c.bf16 %v211_v19, %v210_v61 }
  0xa6   :  { %451 = vmatpush3.bf16.xpose.msk.msra.mxu0 %vm617_vm2, %v449_v15 }
  0xa7   :  { %452 = vmatprep.subr.bf16.mxu0 %v500_v9 }
  0xae   :  { %455 = vmatpush3.bf16.xpose.msk.msra.mxu0 %vm617_vm2, %v453_v29 }
  0xaf   :  { %456 = vmatprep.subr.bf16.mxu0 %v500_v9 }
  0xb6   :  { %459 = vmatpush3.bf16.xpose.msk.msra.mxu0 %vm617_vm2, %v457_v43 }
  0xb7   :  { %460 = vmatprep.subr.bf16.mxu0 %v500_v9 }
  0xbe   :  { %463 = vmatpush3.bf16.xpose.msk.msra.mxu0 %vm617_vm2, %v461_v56 }
  0xbf   :  { %464 = vmatprep.subr.bf16.mxu0 %v500_v9 }
  0xc6   :  { %467 = vmatpush3.bf16.xpose.msk.msra.mxu0 %vm617_vm2, %v465_v62 }
  0xcd   :  { %434 = vmatmul.mubr.msk.f32.vlgmr.msra.gmra.mrb[0].mxu0 %vm214_vm1, %v213_v63 }
 0x1a0   :  { %v332_v0 = vpop.f32.mrb[0].mxu0 }
 0x1a1   :  { %v435_v9 = vpop.f32.mrb[1].mxu0  ;;  %v349_v2 = vadd.f32 %v383_v1, %v332_v0 }
 0x1a3   :  { %350 = vst [vmem:[#allocation2] sm:$0xff] %v349_v2 }
 0x1a4   :  { %486 = shalt.err (!%p483_p4)
}
 0x1a5   :  { %s487_s23 = scalar_lea.hbm %s759_s6, 128 }
 0x1a6   :  { %p488_p5 = scmp.ne.s32.totalorder %s759_s6, %s487_s23  ;;  %p491_p6 = scmp.lt.u32.totalorder %s487_s23, %s759_s6 }
 0x1a8   :  { %p493_p7 = pnand %p491_p6, %p488_p5 }
 0x1aa   :  { %496 = shalt.err (!%p493_p7)
}
 0x1ab   :  { %360 = dma.vmem_to_hbm [thread:$0]  %s358_s20, 128, %s759_s6, [#allocation3]  }
 0x1ac   :  { %497 = dma.done.wait [#allocation3], 128  }
 0x1ad   :  { %498 = vsyncadd [#allocation3], 4294967168 }
 0x1ae   :  { %364 = vsyncpa [#allocation3], 1 }

</bundles_post_ra>
